<compile_context>
chip_gen: v7x
topology: tpu7x:2x2x1
jax: 0.10.0
libtpu: 0.0.40
codegen_flags: <defaults>
</compile_context>

<pallas_src>
import functools

import jax
import jax.numpy as jnp
from jax.experimental import pallas as pl
from jax.experimental.pallas import tpu as pltpu


# ----------------------------------------------------------------------------
# Kernel
# ----------------------------------------------------------------------------
def _label_smoothing_kernel(pred_ref, target_ref, out_ref, *,
                            smoothing, classes, num_tiles, rows_last_tile):
    # pred_ref:   (TN, C) native dtype in VMEM
    # target_ref: (TN, 1) int32 in VMEM
    # out_ref:    (1, 1)  f32 in SMEM -> this tile's partial loss sum
    confidence = 1.0 - smoothing
    off_value = smoothing / (classes - 1) if classes > 1 else 0.0

    x = pred_ref[...].astype(jnp.float32)                      # f32 upcast in-kernel
    tn, c = x.shape

    # log-sum-exp along the class (lane) axis — the only transcendental work.
    # Rows are independent, so garbage rows of a partial last tile only poison
    # their own lse; the per-row mask below zeroes them before accumulation.
    m = jnp.max(x, axis=-1, keepdims=True)                     # (TN, 1)
    lse = m + jnp.log(jnp.sum(jnp.exp(x - m), axis=-1, keepdims=True))

    # x[target] via a single masked select + row reduce; plain row-sum of x.
    col = jax.lax.broadcasted_iota(jnp.int32, (tn, c), 1)      # (TN, C)
    tgt = target_ref[...]                                      # (TN, 1), broadcasts
    x_t = jnp.sum(jnp.where(col == tgt, x, 0.0), axis=-1, keepdims=True)
    x_sum = jnp.sum(x, axis=-1, keepdims=True)

    # sum_j true_dist_j == 1  =>  per-row loss without materializing logp/true_dist.
    loss_row = lse - off_value * x_sum - (confidence - off_value) * x_t   # (TN, 1)

    if rows_last_tile == tn:
        # N divisible by TN: no masking anywhere (fully static decision).
        out_ref[0, 0] = jnp.sum(loss_row)
    else:
        is_last = pl.program_id(0) == num_tiles - 1

        @pl.when(is_last)
        def _():
            row = jax.lax.broadcasted_iota(jnp.int32, (tn, 1), 0)
            valid = row < rows_last_tile
            out_ref[0, 0] = jnp.sum(jnp.where(valid, loss_row, 0.0))

        @pl.when(jnp.logical_not(is_last))
        def _():
            out_ref[0, 0] = jnp.sum(loss_row)


# ----------------------------------------------------------------------------
# Tiling / VMEM sizing helpers
# ----------------------------------------------------------------------------
def _round_up(x, m):
    return -(-x // m) * m


def _vmem_capacity_bytes():
    try:
        return int(pltpu.get_tpu_info().vmem_capacity_bytes)
    except Exception:  # pragma: no cover - conservative fallback (v7x-sized)
        return 64 * 1024 * 1024


def _tile_plan(n, c, itemsize):
    """Pick (tn, num_tiles, c_padded, vmem_limit) generation-aware."""
    c_padded = max(128, _round_up(c, 128))

    vmem_cap = _vmem_capacity_bytes()
    if vmem_cap <= 64 * 1024 * 1024:
        # v7x-class: 64 MiB physical VMEM per TensorCore.
        block_target = 6 * 1024 * 1024      # f32 footprint per pred block
        vmem_ceiling = 32 * 1024 * 1024
    else:
        # v5e / v6e: 128 MiB physical VMEM.
        block_target = 8 * 1024 * 1024
        vmem_ceiling = 64 * 1024 * 1024

    # Budget rows by the *f32* footprint of a block so the in-kernel upcast of a
    # bf16 block never doubles us past the plan.
    rows = block_target // (c_padded * 4)
    rows = max(8, min(n, rows))
    rows = max(8, (rows // 8) * 8)          # sublane multiple
    num_tiles = pl.cdiv(n, rows)

    # >= 2 tiles whenever N allows it (lets both v7x TensorCores stream rows),
    # and balance the tile sizes instead of leaving a tiny remainder tile.
    min_tiles = 2 if n > 8 else 1
    num_tiles = max(num_tiles, min_tiles)
    tn = max(8, _round_up(pl.cdiv(n, num_tiles), 8))
    num_tiles = pl.cdiv(n, tn)

    # VMEM budget: double-buffered native input blocks + ~5 f32-block-sized
    # in-kernel temporaries (upcast x, exp(x-m), masked selects), with headroom.
    blk_native = tn * c_padded * itemsize
    blk_f32 = tn * c_padded * 4
    need = 2 * blk_native + 5 * blk_f32 + (1 << 20)
    vmem_limit = int(min(vmem_ceiling, max(8 * 1024 * 1024, need)))
    return tn, num_tiles, c_padded, vmem_limit


# ----------------------------------------------------------------------------
# Public wrapper
# ----------------------------------------------------------------------------
_SMALL_C_THRESHOLD = 32   # below this the class-last lane layout is too sparse


def _label_smoothing_loss_jax(pred, target, *, smoothing):
    """Fused pure-JAX path for tiny class counts (C << 128)."""
    n, c = pred.shape
    confidence = 1.0 - smoothing
    off_value = smoothing / (c - 1) if c > 1 else 0.0
    x = pred.astype(jnp.float32)
    lse = jax.nn.logsumexp(x, axis=-1)
    idx = target.reshape(n, 1).astype(jnp.int32)
    x_t = jnp.take_along_axis(x, idx, axis=-1)[:, 0]
    loss = lse - off_value * jnp.sum(x, axis=-1) - (confidence - off_value) * x_t
    return jnp.mean(loss)


def label_smoothing_loss(pred, target, *, smoothing=0.05, use_pallas=None):
    """pred: (N, C) float array (f32 or bf16), target: (N,) int array -> scalar f32."""
    n, c = pred.shape

    if use_pallas is None:
        use_pallas = c >= _SMALL_C_THRESHOLD
    if not use_pallas:
        return _label_smoothing_loss_jax(pred, target, smoothing=smoothing)

    target2d = target.reshape(n, 1).astype(jnp.int32)
    itemsize = jnp.dtype(pred.dtype).itemsize

    tn, num_tiles, _c_padded, vmem_limit = _tile_plan(n, c, itemsize)
    rows_last_tile = n - (num_tiles - 1) * tn   # == tn when N % TN == 0

    kernel = functools.partial(
        _label_smoothing_kernel,
        smoothing=float(smoothing),
        classes=int(c),
        num_tiles=int(num_tiles),
        rows_last_tile=int(rows_last_tile),
    )

    cost = pl.CostEstimate(
        flops=5 * n * c,
        transcendentals=n * c + n,
        bytes_accessed=n * c * itemsize + 4 * n + 4 * num_tiles,
    )

    partials = pl.pallas_call(
        kernel,
        out_shape=jax.ShapeDtypeStruct((num_tiles, 1), jnp.float32),
        grid=(num_tiles,),
        in_specs=[
            pl.BlockSpec((tn, c), lambda i: (i, 0)),   # pred row tile (native dtype)
            pl.BlockSpec((tn, 1), lambda i: (i, 0)),   # target row tile
        ],
        out_specs=pl.BlockSpec(
            (1, 1), lambda i: (i, 0), memory_space=pltpu.MemorySpace.SMEM
        ),
        compiler_params=pltpu.CompilerParams(
            dimension_semantics=("parallel",),   # rows independent -> both v7x TCs
            vmem_limit_bytes=vmem_limit,
        ),
        cost_estimate=cost,
    )(pred, target2d)

    # Tiny finalize in plain JAX: sum of per-tile partial sums, divide by total N.
    return jnp.sum(partials) / n


# ----------------------------------------------------------------------------
# Reference + self-test
# ----------------------------------------------------------------------------
def _reference_loss(pred, target, *, smoothing=0.05):
    # Pure-JAX replication of the PyTorch module semantics.
    n, c = pred.shape
    confidence = 1.0 - smoothing
    logp = jax.nn.log_softmax(pred.astype(jnp.float32), axis=-1)
    true_dist = jnp.full((n, c), smoothing / (c - 1), jnp.float32)
    true_dist = true_dist.at[jnp.arange(n), target].set(confidence)
    return jnp.mean(jnp.sum(-true_dist * logp, axis=-1))


if __name__ == "__main__":
    key = jax.random.PRNGKey(0)
    ks = jax.random.split(key, 6)

    # Case 1: module defaults (classes=3), tiny batch, f32 — Pallas path forced.
    N1, C1 = 8, 3
    pred1 = jax.random.normal(ks[0], (N1, C1), dtype=jnp.float32)
    tgt1 = jax.random.randint(ks[1], (N1,), 0, C1, dtype=jnp.int32)
    loss1 = label_smoothing_loss(pred1, tgt1, smoothing=0.05, use_pallas=True)
    jax.block_until_ready(loss1)
    ref1 = _reference_loss(pred1, tgt1, smoothing=0.05)
    assert jnp.allclose(loss1, ref1, atol=1e-5, rtol=1e-5), (loss1, ref1)
    # Auto-dispatch for tiny C routes to the fused pure-JAX path — must agree too.
    loss1b = label_smoothing_loss(pred1, tgt1, smoothing=0.05)
    jax.block_until_ready(loss1b)
    assert jnp.allclose(loss1b, ref1, atol=1e-5, rtol=1e-5), (loss1b, ref1)

    # Case 2: N not a multiple of the row tile (last-tile pl.when mask) with
    # bf16 fed natively — the f32 cast happens inside the kernel.
    N2, C2 = 300, 3
    pred2 = jax.random.normal(ks[2], (N2, C2), dtype=jnp.float32).astype(jnp.bfloat16)
    tgt2 = jax.random.randint(ks[3], (N2,), 0, C2, dtype=jnp.int32)
    loss2 = label_smoothing_loss(pred2, tgt2, smoothing=0.05, use_pallas=True)
    jax.block_until_ready(loss2)
    ref2 = _reference_loss(pred2, tgt2, smoothing=0.05)
    assert jnp.allclose(loss2, ref2, atol=1e-4, rtol=1e-4), (loss2, ref2)

    # Case 3: lane-dense class count, auto dispatch -> Pallas, >= 2 balanced tiles.
    N3, C3 = 384, 512
    pred3 = jax.random.normal(ks[4], (N3, C3), dtype=jnp.float32).astype(jnp.bfloat16)
    tgt3 = jax.random.randint(ks[5], (N3,), 0, C3, dtype=jnp.int32)
    loss3 = label_smoothing_loss(pred3, tgt3, smoothing=0.05)
    jax.block_until_ready(loss3)
    ref3 = _reference_loss(pred3, tgt3, smoothing=0.05)
    assert jnp.allclose(loss3, ref3, atol=1e-3, rtol=1e-3), (loss3, ref3)

    print("KERNEL_OK")
</pallas_src>

<mosaic_0001>
module attributes {stable_mosaic.version = 11 : i64} {
  func.func @_label_smoothing_kernel(%arg0: i32, %arg1: memref<8x3xf32, #tpu.memory_space<vmem>>, %arg2: memref<8x1xi32, #tpu.memory_space<vmem>>, %arg3: memref<1x1xf32, #tpu.memory_space<smem>>) attributes {dimension_semantics = [#tpu.dimension_semantics<parallel>], iteration_bounds = array<i64: 1>, scalar_prefetch = 0 : i64, scratch_operands = 0 : i64, tpu.core_type = #tpu.core_type<tc>, window_params = [{transform_indices = @transform_0, window_bounds = array<i64: 8, 3>}, {transform_indices = @transform_1, window_bounds = array<i64: 8, 1>}, {transform_indices = @transform_2, window_bounds = array<i64: 1, 1>}]} {
    %c0 = arith.constant 0 : index
    %c0_0 = arith.constant 0 : index
    %0 = vector.load %arg1[%c0, %c0_0] : memref<8x3xf32, #tpu.memory_space<vmem>>, vector<8x3xf32>
    %cst = arith.constant dense<0xFF800000> : vector<8xf32>
    %1 = vector.multi_reduction <maximumf>, %0, %cst [1] : vector<8x3xf32> to vector<8xf32>
    %2 = vector.shape_cast %1 : vector<8xf32> to vector<8x1xf32>
    %3 = vector.broadcast %2 : vector<8x1xf32> to vector<8x3xf32>
    %4 = arith.subf %0, %3 : vector<8x3xf32>
    %5 = math.exp %4 : vector<8x3xf32>
    %cst_1 = arith.constant dense<0.000000e+00> : vector<8xf32>
    %6 = vector.multi_reduction <add>, %5, %cst_1 [1] : vector<8x3xf32> to vector<8xf32>
    %7 = vector.shape_cast %6 : vector<8xf32> to vector<8x1xf32>
    %8 = math.log %7 : vector<8x1xf32>
    %9 = arith.addf %2, %8 : vector<8x1xf32>
    %10 = tpu.iota {dimensions = array<i32: 1>} : vector<8x3xi32>
    %c0_2 = arith.constant 0 : index
    %c0_3 = arith.constant 0 : index
    %11 = vector.load %arg2[%c0_2, %c0_3] : memref<8x1xi32, #tpu.memory_space<vmem>>, vector<8x1xi32>
    %12 = vector.broadcast %11 : vector<8x1xi32> to vector<8x3xi32>
    %13 = arith.cmpi eq, %10, %12 : vector<8x3xi32>
    %cst_4 = arith.constant 0.000000e+00 : f32
    %14 = vector.broadcast %cst_4 : f32 to vector<8x3xf32>
    %15 = arith.select %13, %0, %14 : vector<8x3xi1>, vector<8x3xf32>
    %cst_5 = arith.constant dense<0.000000e+00> : vector<8xf32>
    %16 = vector.multi_reduction <add>, %15, %cst_5 [1] : vector<8x3xf32> to vector<8xf32>
    %17 = vector.shape_cast %16 : vector<8xf32> to vector<8x1xf32>
    %cst_6 = arith.constant dense<0.000000e+00> : vector<8xf32>
    %18 = vector.multi_reduction <add>, %0, %cst_6 [1] : vector<8x3xf32> to vector<8xf32>
    %19 = vector.shape_cast %18 : vector<8xf32> to vector<8x1xf32>
    %cst_7 = arith.constant 2.500000e-02 : f32
    %20 = vector.broadcast %cst_7 : f32 to vector<8x1xf32>
    %21 = arith.mulf %20, %19 : vector<8x1xf32>
    %22 = arith.subf %9, %21 : vector<8x1xf32>
    %cst_8 = arith.constant 9.250000e-01 : f32
    %23 = vector.broadcast %cst_8 : f32 to vector<8x1xf32>
    %24 = arith.mulf %23, %17 : vector<8x1xf32>
    %25 = arith.subf %22, %24 : vector<8x1xf32>
    %26 = vector.shape_cast %25 : vector<8x1xf32> to vector<1x8x1xf32>
    %cst_9 = arith.constant dense<0.000000e+00> : vector<1xf32>
    %27 = vector.multi_reduction <add>, %26, %cst_9 [1, 2] : vector<1x8x1xf32> to vector<1xf32>
    %28 = vector.shape_cast %27 : vector<1xf32> to vector<1x1x1xf32>
    %29 = vector.extract %28[0, 0, 0] : f32 from vector<1x1x1xf32>
    %c0_10 = arith.constant 0 : index
    %c0_11 = arith.constant 0 : index
    %30 = memref.load %arg3[%c0_10, %c0_11] : memref<1x1xf32, #tpu.memory_space<smem>>
    memref.store %29, %arg3[%c0_10, %c0_11] : memref<1x1xf32, #tpu.memory_space<smem>>
    return
  }
  func.func @transform_0(%arg0: i32) -> (i32, i32) {
    %c0_i32 = arith.constant 0 : i32
    %c0_i32_0 = arith.constant 0 : i32
    return %arg0, %c0_i32 : i32, i32
  }
  func.func @transform_1(%arg0: i32) -> (i32, i32) {
    %c0_i32 = arith.constant 0 : i32
    %c0_i32_0 = arith.constant 0 : i32
    return %arg0, %c0_i32 : i32, i32
  }
  func.func @transform_2(%arg0: i32) -> (i32, i32) {
    %c0_i32 = arith.constant 0 : i32
    %c0_i32_0 = arith.constant 0 : i32
    return %arg0, %c0_i32 : i32, i32
  }
}

</mosaic_0001>

<bundles_post_ra>
// kernel: tpu_custom_call.1
= control target key start
LH: loop header
LB: loop body
LE: loop exit
PB: predicated region body
PF: predicated region fallthrough
CT: control target
= control target key end

     0   :  { %vm13_vm0 = vcmask 23552   ;;  %s130_s0 = inlined_call_operand.vmem [shape: f32[8,3], index: 0, kind: input, shape index: {}]   ;;  %s131_s1 = inlined_call_operand.vmem [shape: s32[8,1], index: 1, kind: input, shape index: {}]   ;;  %s132_s2 = inlined_call_operand.hbm [shape: f32[1,1], index: 2, kind: output, shape index: {}]  }
   0x1   :  { %v12_v0 = vld [vmem:[%s130_s0] sm:$0xff] }
   0x2   :  { %7 = vsyncpa [#allocation3], 0  ;;  %v14_v1 = vsel %vm13_vm0, %v12_v0, -inf  ;;  %v91_v2 = vmov 0   ;;  %v28_v3 = vld [vmem:[%s131_s1] sm:$0xff]  ;;  %v26_v7 = vlaneseq  ;;  %v37_v12 = vsel %vm13_vm0, %v12_v0, 0.0 }
   0x3   :  { %74 = vset.pattern.permute.xlu0 %v91_v2  ;;  %vm44_vm2 = vcmask 7168   ;;  %s79_s14 = scalar_lea.hbm %s132_s2, 16 }
   0x4   :  { %15 = vmax.xlane.f32.xlu0 %v14_v1  ;;  %v27_v8 = vand.u32 127, %v26_v7  ;;  %p80_p0 = scmp.ne.s32.totalorder %s132_s2, %s79_s14  ;;  %p83_p1 = scmp.lt.u32.totalorder %s79_s14, %s132_s2 }
   0x6   :  { %p85_p2 = pnand %p83_p1, %p80_p0 }
  0x1a   :  { %30 = vperm.xlu0 %74, %v28_v3  }
  0x91   :  { %v16_v4 = vpop.xlane.xlu0 %15 }
  0x92   :  { %v17_v5 = vsub.f32 %v12_v0, %v16_v4 }
  0x94   :  { %v18_v6 = vmul.f32 1.442695, %v17_v5 }
  0x96   :  { %75 = vpow2.f32 %v18_v6 }
  0x99   :  { %v31_v9 = vpop.permute.xlu0 %30 }
  0x9a   :  { %vm32_vm1 = vcmp.eq.s32.totalorder %v27_v8, %v31_v9 }
  0x9b   :  { %v33_v13 = vsel %vm32_vm1, %v12_v0, 0.0 }
  0x9c   :  { %v34_v14 = vsel %vm13_vm0, %v33_v13, 0.0 }
  0xa0   :  { %v76_v10 = vpop.eup %75 }
  0xa1   :  { %v20_v11 = vsel %vm13_vm0, %v76_v10, 0.0 }
  0xa2   :  { %21 = vadd.xlane.f32.xlu1 %v20_v11 }
  0xa6   :  { %38 = vadd.xlane.f32.xlu1 %v37_v12 }
  0xaa   :  { %35 = vadd.xlane.f32.xlu1 %v34_v14 }
 0x12f   :  { %v22_v15 = vpop.xlane.xlu1 %21 }
 0x130   :  { %77 = vlog2.f32 %v22_v15 }
 0x133   :  { %v39_v16 = vpop.xlane.xlu1 %38 }
 0x134   :  { %v40_v21 = vmul.f32 0.025, %v39_v16 }
 0x137   :  { %v36_v18 = vpop.xlane.xlu1 %35 }
 0x138   :  { %v42_v22 = vmul.f32 0.925, %v36_v18 }
 0x13a   :  { %v78_v17 = vpop.eup %77 }
 0x13b   :  { %v24_v19 = vmul.f32 0.6931472, %v78_v17 }
 0x13d   :  { %v25_v20 = vadd.f32 %v24_v19, %v16_v4 }
 0x13f   :  { %v41_v23 = vsub.f32 %v25_v20, %v40_v21 }
 0x141   :  { %v43_v24 = vsub.f32 %v41_v23, %v42_v22 }
 0x143   :  { %v45_v25 = vsel %vm44_vm2, %v43_v24, 0.0 }
 0x144   :  { %46 = vadd.xlane.f32.xlu1 %v45_v25 }
 0x1d1   :  { %v47_v26 = vpop.xlane.xlu1 %46 }
 0x1d2   :  { %v48_v27 = vrot.slane %v47_v26, 4 }
 0x1d4   :  { %v49_v28 = vadd.f32 %v48_v27, %v47_v26 }
 0x1d6   :  { %v50_v29 = vrot.slane %v49_v28, 2 }
 0x1d8   :  { %v51_v30 = vadd.f32 %v50_v29, %v49_v28 }
 0x1da   :  { %v52_v31 = vrot.slane %v51_v30, 1 }
 0x1dc   :  { %v53_v32 = vadd.f32 %v52_v31, %v51_v30 }
 0x1de   :  { %70 = vpush %v53_v32 }
 0x20f   :  { %s71_s0 = spop %70 }
 0x210   :  { %56 = sst [smem:[#allocation2]] %s71_s0 }
 0x211   :  { %88 = shalt.err (!%p85_p2)
}
 0x212   :  { %s92_s19 = smov [#allocation2]  }
 0x213   :  { %64 = dma.smem_to_hbm %s92_s19, 16, %s132_s2, [#allocation3]  }
 0x214   :  { %89 = dma.done.wait [#allocation3], 16  }
 0x215   :  { %90 = vsyncadd [#allocation3], 4294967280 }
 0x216   :  { %68 = sfence }
 0x217   :  { %69 = vsyncpa [#allocation3], 1 }

</bundles_post_ra>
